<compile_context>
chip_gen: v7x
topology: tpu7x:2x2x1
jax: 0.10.0
libtpu: 0.0.40
codegen_flags: <defaults>
</compile_context>

<pallas_src>
import functools
import math

import jax
import jax.numpy as jnp
from jax import lax
from jax.experimental import pallas as pl
from jax.experimental.pallas import tpu as pltpu

EPS = 1e-5  # PyTorch BatchNorm default


# ------------------------------ fused Pallas kernel ------------------------------ #

def _resblock_kernel(x_ref, w1id_ref, w2_ref, bn_ref, o_ref, *, H, W, ks, nh2):
    """Whole ResBlock forward on a VMEM-resident channel-major (C, M) slab.

    x_ref    : (Cpad, M)              channel-major input (zero-padded to 8 sublanes)
    w1id_ref : (nh2+nf, ks*ks*Cpad)   conv1 weights stacked tap-major + idpath rows
                                      (wid in the center-tap column block)
    w2_ref   : (nf, ks*ks*nh2)        conv2 weights stacked tap-major
    bn_ref   : (6, nf, 1)             packed BN affine params [g1, b1, g2, b2, gid, bid]
    o_ref    : (nf, M)                output (lane-dense; M is a multiple of 128)
    """
    M = x_ref.shape[1]
    pad = (ks - 1) // 2

    # ---- in-kernel "same"-padding validity masks (factored row x col, no HBM DMA) ----
    m_iota = lax.broadcasted_iota(jnp.int32, (1, M), 1)
    if W & (W - 1) == 0:                       # power-of-two fast path: pure bit ops
        wpos = m_iota & (W - 1)
        hw = m_iota >> (W.bit_length() - 1)
    else:
        wpos = m_iota % W
        hw = m_iota // W
    hpos = (hw & (H - 1)) if (H & (H - 1) == 0) else (hw % H)

    def bound_mask(pos, d, extent):
        if d == 0:
            return None                         # all-ones: skip the multiply
        ok = (pos + d >= 0) & (pos + d < extent)
        return ok.astype(jnp.float32)           # (1, M)

    row_m = {dh: bound_mask(hpos, dh, H) for dh in range(-pad, pad + 1)}
    col_m = {dw: bound_mask(wpos, dw, W) for dw in range(-pad, pad + 1)}

    def build_stack(inp):
        # In-vreg im2col: stack the ks*ks shifted+masked taps along the sublane axis so a
        # single deep MXU matmul replaces the per-tap accumulate chain.  pltpu.roll matches
        # jnp.roll (result[m] = x[m - shift]); we want x[m + off], hence shift = (-off) % M.
        # Circular wrap-around only lands on positions the padding mask zeroes out.
        taps = []
        for dh in range(-pad, pad + 1):
            for dw in range(-pad, pad + 1):
                off = dh * W + dw
                shifted = inp if off == 0 else pltpu.roll(inp, shift=(-off) % M, axis=1)
                rm, cm = row_m[dh], col_m[dw]
                if rm is None and cm is None:
                    tap = shifted               # center tap: mask is all ones
                elif rm is None:
                    tap = shifted * cm
                elif cm is None:
                    tap = shifted * rm
                else:
                    tap = shifted * (rm * cm)
                taps.append(tap)
        return jnp.concatenate(taps, axis=0)    # (ks*ks*Cpad, M); 8-row blocks -> aligned

    def bn(acc, idx):
        # One-pass training-mode BatchNorm over M = N*H*W, folded to per-channel scale/shift.
        gamma = bn_ref[2 * idx]                 # (C, 1)
        beta = bn_ref[2 * idx + 1]              # (C, 1)
        inv_m = 1.0 / M
        mean = jnp.sum(acc, axis=1, keepdims=True) * inv_m
        ex2 = jnp.sum(acc * acc, axis=1, keepdims=True) * inv_m
        scale = gamma * lax.rsqrt(ex2 - mean * mean + EPS)   # biased var = E[x^2] - mean^2
        shift = beta - mean * scale
        return acc * scale + shift

    x = x_ref[...]                                            # (Cpad, M) f32

    # conv1 (3x3) + idpath (1x1) as ONE deep matmul over the stacked taps.
    s1 = build_stack(x)                                       # (9*Cpad, M)
    h = jnp.dot(w1id_ref[...], s1, preferred_element_type=jnp.float32)   # (nh2+nf, M)
    y1 = jnp.maximum(bn(h[:nh2, :], 0), 0.0)                  # conv1 -> BN -> ReLU
    idp = bn(h[nh2:, :], 2)                                   # 1x1 idpath -> BN

    # conv2 (3x3) as one deep matmul.
    s2 = build_stack(y1)                                      # (9*nh2, M)
    y2 = bn(jnp.dot(w2_ref[...], s2, preferred_element_type=jnp.float32), 1)  # BN_zero

    o_ref[...] = jnp.maximum(y2 + idp, 0.0).astype(o_ref.dtype)


# --------------------------------- JAX wrapper ----------------------------------- #

def resblock_forward(x_nchw, params):
    """ResBlock(expansion=1, ni, nf, stride=1) forward.  (N, ni, H, W) -> (N, nf, H, W)."""
    N, Cin, H, W = x_nchw.shape
    M = N * H * W
    w1, w2, wid = params["w1"], params["w2"], params["wid"]
    T = w1.shape[0]
    ks = math.isqrt(T)
    nh2, nf = w1.shape[1], w2.shape[1]
    assert nh2 == nf, "packed BN params assume nh2 == nf (true for expansion=1 default)"
    assert nh2 % 8 == 0, "conv2 tap stacking assumes sublane-aligned hidden channels"
    assert M % 128 == 0, "flat N*H*W should be lane-aligned for an unmasked output store"
    assert H >= ks and W >= ks, "roll+mask scheme requires pad < H and pad < W"

    cin_pad = max(8, ((Cin + 7) // 8) * 8)      # sublane-align each tap block
    center = (T - 1) // 2                       # (0,0) tap in (dh, dw) row-major order

    # Channel-major lane-dense input slab, zero-padded to cin_pad channels.
    # TODO(synk): at scale, feed NCHW through a BlockSpec grid over N so this relayout
    # rides the pipelined DMA instead of a standalone XLA transpose pass.
    x_cm = jnp.transpose(x_nchw, (1, 0, 2, 3)).reshape(Cin, M)
    x_pad = jnp.zeros((cin_pad, M), jnp.float32).at[:Cin].set(x_cm)

    # Pre-stack weights (tiny, one-time): columns ordered tap-major, cin_pad per tap.
    w1p = jnp.zeros((T, nh2, cin_pad), jnp.float32).at[:, :, :Cin].set(w1)
    w1s = jnp.transpose(w1p, (1, 0, 2)).reshape(nh2, T * cin_pad)
    wid_s = (jnp.zeros((nf, T * cin_pad), jnp.float32)
             .at[:, center * cin_pad:center * cin_pad + Cin].set(wid))
    w1id = jnp.concatenate([w1s, wid_s], axis=0)              # (nh2+nf, T*cin_pad)
    w2s = jnp.transpose(w2, (1, 0, 2)).reshape(nf, T * nh2)   # (nf, T*nh2)

    bn_pack = jnp.stack([params["g1"], params["b1"], params["g2"], params["b2"],
                         params["gid"], params["bid"]]).reshape(6, nf, 1)

    vmem = pl.BlockSpec(memory_space=pltpu.MemorySpace.VMEM)
    out_cm = pl.pallas_call(
        functools.partial(_resblock_kernel, H=H, W=W, ks=ks, nh2=nh2),
        out_shape=jax.ShapeDtypeStruct((nf, M), jnp.float32),
        in_specs=[vmem] * 4,
        out_specs=vmem,
    )(x_pad, w1id, w2s, bn_pack)

    return jnp.transpose(out_cm.reshape(nf, N, H, W), (1, 0, 2, 3))  # back to NCHW


# ------------------------------ reference (pure JAX) ------------------------------ #

def ref_forward(x_nchw, params):
    w1, w2, wid = params["w1"], params["w2"], params["wid"]
    ks = math.isqrt(w1.shape[0])
    pad = (ks - 1) // 2
    x = jnp.transpose(x_nchw, (0, 2, 3, 1))                     # NHWC

    def to_hwio(w_tap_major):                                   # (ks*ks, Cout, Cin) -> HWIO
        _, co, ci = w_tap_major.shape
        return jnp.transpose(w_tap_major.reshape(ks, ks, co, ci), (0, 1, 3, 2))

    def conv(h, w_hwio, p):
        return lax.conv_general_dilated(h, w_hwio, (1, 1), ((p, p), (p, p)),
                                        dimension_numbers=("NHWC", "HWIO", "NHWC"))

    def bn(h, gamma, beta):
        mean = h.mean(axis=(0, 1, 2), keepdims=True)
        var = jnp.square(h - mean).mean(axis=(0, 1, 2), keepdims=True)
        return ((h - mean) * lax.rsqrt(var + EPS) * gamma.reshape(1, 1, 1, -1)
                + beta.reshape(1, 1, 1, -1))

    h = jax.nn.relu(bn(conv(x, to_hwio(w1), pad), params["g1"], params["b1"]))
    h = bn(conv(h, to_hwio(w2), pad), params["g2"], params["b2"])
    wid_hwio = jnp.transpose(wid, (1, 0)).reshape(1, 1, wid.shape[1], wid.shape[0])
    idp = bn(conv(x, wid_hwio, 0), params["gid"], params["bid"])
    return jnp.transpose(jax.nn.relu(h + idp), (0, 3, 1, 2))    # back to NCHW


# -------------------------------- parameter init ---------------------------------- #

def init_params(key, ni, nf, ks=3):
    nh2 = nf                         # expansion == 1: nh2 defaults to nf
    k1, k2, k3 = jax.random.split(key, 3)

    def kaiming(k, taps, cout, cin):  # kaiming_normal_: fan_in = cin*taps, gain sqrt(2); convs are bias-free
        std = math.sqrt(2.0 / (cin * taps))
        return jax.random.normal(k, (taps, cout, cin), jnp.float32) * std

    return dict(
        w1=kaiming(k1, ks * ks, nh2, ni),                                # (9, nh2, ni), taps (kh, kw)
        g1=jnp.ones((nh2,), jnp.float32), b1=jnp.full((nh2,), 1e-3, jnp.float32),
        w2=kaiming(k2, ks * ks, nf, nh2),                                # (9, nf, nh2)
        g2=jnp.zeros((nf,), jnp.float32), b2=jnp.full((nf,), 1e-3, jnp.float32),   # BatchZero
        wid=kaiming(k3, 1, nf, ni)[0],                                   # (nf, ni)
        gid=jnp.ones((nf,), jnp.float32), bid=jnp.full((nf,), 1e-3, jnp.float32),
    )


# ------------------------------------- main ---------------------------------------- #

if __name__ == "__main__":
    key = jax.random.PRNGKey(0)
    kx, kp = jax.random.split(key)

    N, C_in, H, W = 2, 4, 16, 16      # PyTorch-convention NCHW input
    nf = 8

    x = jax.random.normal(kx, (N, C_in, H, W), jnp.float32)
    params = init_params(kp, C_in, nf, ks=3)

    fwd = jax.jit(resblock_forward)
    out = jax.block_until_ready(fwd(x, params))
    ref = ref_forward(x, params)

    assert out.shape == (N, nf, H, W), out.shape
    max_err = float(jnp.max(jnp.abs(out - ref)))
    assert jnp.allclose(out, ref, rtol=1e-4, atol=1e-4), max_err

    # TODO(synk): the AvgPool(ceil_mode=True) idpath branch only exists for stride != 1;
    # this config (stride=1) has no pool, so it is not implemented here.
    print("KERNEL_OK")
</pallas_src>

<mosaic_0001>
module attributes {stable_mosaic.version = 11 : i64} {
  func.func @_resblock_kernel(%arg0: memref<8x512xf32, #tpu.memory_space<vmem>>, %arg1: memref<16x72xf32, #tpu.memory_space<vmem>>, %arg2: memref<8x72xf32, #tpu.memory_space<vmem>>, %arg3: memref<6x8x1xf32, #tpu.memory_space<vmem>>, %arg4: memref<8x512xf32, #tpu.memory_space<vmem>>) attributes {dimension_semantics = [], scalar_prefetch = 0 : i64, scratch_operands = 0 : i64, tpu.core_type = #tpu.core_type<tc>} {
    %0 = tpu.iota {dimensions = array<i32: 1>} : vector<1x512xi32>
    %c15_i32 = arith.constant 15 : i32
    %1 = vector.broadcast %c15_i32 : i32 to vector<1x512xi32>
    %2 = arith.andi %0, %1 : vector<1x512xi32>
    %c4_i32 = arith.constant 4 : i32
    %3 = vector.broadcast %c4_i32 : i32 to vector<1x512xi32>
    %4 = arith.shrsi %0, %3 : vector<1x512xi32>
    %c15_i32_0 = arith.constant 15 : i32
    %5 = vector.broadcast %c15_i32_0 : i32 to vector<1x512xi32>
    %6 = arith.andi %4, %5 : vector<1x512xi32>
    %c-1_i32 = arith.constant -1 : i32
    %7 = vector.broadcast %c-1_i32 : i32 to vector<1x512xi32>
    %8 = arith.addi %6, %7 : vector<1x512xi32>
    %c0_i32 = arith.constant 0 : i32
    %9 = vector.broadcast %c0_i32 : i32 to vector<1x512xi32>
    %10 = arith.cmpi sge, %8, %9 : vector<1x512xi32>
    %c-1_i32_1 = arith.constant -1 : i32
    %11 = vector.broadcast %c-1_i32_1 : i32 to vector<1x512xi32>
    %12 = arith.addi %6, %11 : vector<1x512xi32>
    %c16_i32 = arith.constant 16 : i32
    %13 = vector.broadcast %c16_i32 : i32 to vector<1x512xi32>
    %14 = arith.cmpi slt, %12, %13 : vector<1x512xi32>
    %15 = arith.andi %10, %14 : vector<1x512xi1>
    %16 = arith.extui %15 : vector<1x512xi1> to vector<1x512xi32>
    %17 = arith.sitofp %16 : vector<1x512xi32> to vector<1x512xf32>
    %c1_i32 = arith.constant 1 : i32
    %18 = vector.broadcast %c1_i32 : i32 to vector<1x512xi32>
    %19 = arith.addi %6, %18 : vector<1x512xi32>
    %c0_i32_2 = arith.constant 0 : i32
    %20 = vector.broadcast %c0_i32_2 : i32 to vector<1x512xi32>
    %21 = arith.cmpi sge, %19, %20 : vector<1x512xi32>
    %c1_i32_3 = arith.constant 1 : i32
    %22 = vector.broadcast %c1_i32_3 : i32 to vector<1x512xi32>
    %23 = arith.addi %6, %22 : vector<1x512xi32>
    %c16_i32_4 = arith.constant 16 : i32
    %24 = vector.broadcast %c16_i32_4 : i32 to vector<1x512xi32>
    %25 = arith.cmpi slt, %23, %24 : vector<1x512xi32>
    %26 = arith.andi %21, %25 : vector<1x512xi1>
    %27 = arith.extui %26 : vector<1x512xi1> to vector<1x512xi32>
    %28 = arith.sitofp %27 : vector<1x512xi32> to vector<1x512xf32>
    %c-1_i32_5 = arith.constant -1 : i32
    %29 = vector.broadcast %c-1_i32_5 : i32 to vector<1x512xi32>
    %30 = arith.addi %2, %29 : vector<1x512xi32>
    %c0_i32_6 = arith.constant 0 : i32
    %31 = vector.broadcast %c0_i32_6 : i32 to vector<1x512xi32>
    %32 = arith.cmpi sge, %30, %31 : vector<1x512xi32>
    %c-1_i32_7 = arith.constant -1 : i32
    %33 = vector.broadcast %c-1_i32_7 : i32 to vector<1x512xi32>
    %34 = arith.addi %2, %33 : vector<1x512xi32>
    %c16_i32_8 = arith.constant 16 : i32
    %35 = vector.broadcast %c16_i32_8 : i32 to vector<1x512xi32>
    %36 = arith.cmpi slt, %34, %35 : vector<1x512xi32>
    %37 = arith.andi %32, %36 : vector<1x512xi1>
    %38 = arith.extui %37 : vector<1x512xi1> to vector<1x512xi32>
    %39 = arith.sitofp %38 : vector<1x512xi32> to vector<1x512xf32>
    %c1_i32_9 = arith.constant 1 : i32
    %40 = vector.broadcast %c1_i32_9 : i32 to vector<1x512xi32>
    %41 = arith.addi %2, %40 : vector<1x512xi32>
    %c0_i32_10 = arith.constant 0 : i32
    %42 = vector.broadcast %c0_i32_10 : i32 to vector<1x512xi32>
    %43 = arith.cmpi sge, %41, %42 : vector<1x512xi32>
    %c1_i32_11 = arith.constant 1 : i32
    %44 = vector.broadcast %c1_i32_11 : i32 to vector<1x512xi32>
    %45 = arith.addi %2, %44 : vector<1x512xi32>
    %c16_i32_12 = arith.constant 16 : i32
    %46 = vector.broadcast %c16_i32_12 : i32 to vector<1x512xi32>
    %47 = arith.cmpi slt, %45, %46 : vector<1x512xi32>
    %48 = arith.andi %43, %47 : vector<1x512xi1>
    %49 = arith.extui %48 : vector<1x512xi1> to vector<1x512xi32>
    %50 = arith.sitofp %49 : vector<1x512xi32> to vector<1x512xf32>
    %c0 = arith.constant 0 : index
    %c0_13 = arith.constant 0 : index
    %51 = vector.load %arg0[%c0, %c0_13] : memref<8x512xf32, #tpu.memory_space<vmem>>, vector<8x512xf32>
    %c17_i32 = arith.constant 17 : i32
    %52 = tpu.dynamic_rotate %51 by %c17_i32 dim 1 : vector<8x512xf32>, i32 -> vector<8x512xf32>
    %53 = arith.mulf %17, %39 : vector<1x512xf32>
    %54 = vector.broadcast %53 : vector<1x512xf32> to vector<8x512xf32>
    %55 = arith.mulf %52, %54 : vector<8x512xf32>
    %c16_i32_14 = arith.constant 16 : i32
    %56 = tpu.dynamic_rotate %51 by %c16_i32_14 dim 1 : vector<8x512xf32>, i32 -> vector<8x512xf32>
    %57 = vector.broadcast %17 : vector<1x512xf32> to vector<8x512xf32>
    %58 = arith.mulf %56, %57 : vector<8x512xf32>
    %c15_i32_15 = arith.constant 15 : i32
    %59 = tpu.dynamic_rotate %51 by %c15_i32_15 dim 1 : vector<8x512xf32>, i32 -> vector<8x512xf32>
    %60 = arith.mulf %17, %50 : vector<1x512xf32>
    %61 = vector.broadcast %60 : vector<1x512xf32> to vector<8x512xf32>
    %62 = arith.mulf %59, %61 : vector<8x512xf32>
    %c1_i32_16 = arith.constant 1 : i32
    %63 = tpu.dynamic_rotate %51 by %c1_i32_16 dim 1 : vector<8x512xf32>, i32 -> vector<8x512xf32>
    %64 = vector.broadcast %39 : vector<1x512xf32> to vector<8x512xf32>
    %65 = arith.mulf %63, %64 : vector<8x512xf32>
    %c511_i32 = arith.constant 511 : i32
    %66 = tpu.dynamic_rotate %51 by %c511_i32 dim 1 : vector<8x512xf32>, i32 -> vector<8x512xf32>
    %67 = vector.broadcast %50 : vector<1x512xf32> to vector<8x512xf32>
    %68 = arith.mulf %66, %67 : vector<8x512xf32>
    %c497_i32 = arith.constant 497 : i32
    %69 = tpu.dynamic_rotate %51 by %c497_i32 dim 1 : vector<8x512xf32>, i32 -> vector<8x512xf32>
    %70 = arith.mulf %28, %39 : vector<1x512xf32>
    %71 = vector.broadcast %70 : vector<1x512xf32> to vector<8x512xf32>
    %72 = arith.mulf %69, %71 : vector<8x512xf32>
    %c496_i32 = arith.constant 496 : i32
    %73 = tpu.dynamic_rotate %51 by %c496_i32 dim 1 : vector<8x512xf32>, i32 -> vector<8x512xf32>
    %74 = vector.broadcast %28 : vector<1x512xf32> to vector<8x512xf32>
    %75 = arith.mulf %73, %74 : vector<8x512xf32>
    %c495_i32 = arith.constant 495 : i32
    %76 = tpu.dynamic_rotate %51 by %c495_i32 dim 1 : vector<8x512xf32>, i32 -> vector<8x512xf32>
    %77 = arith.mulf %28, %50 : vector<1x512xf32>
    %78 = vector.broadcast %77 : vector<1x512xf32> to vector<8x512xf32>
    %79 = arith.mulf %76, %78 : vector<8x512xf32>
    %80 = tpu.concatenate %55, %58, %62, %65, %51, %68, %72, %75, %79 in 0 : vector<8x512xf32>, vector<8x512xf32>, vector<8x512xf32>, vector<8x512xf32>, vector<8x512xf32>, vector<8x512xf32>, vector<8x512xf32>, vector<8x512xf32>, vector<8x512xf32> -> vector<72x512xf32>
    %c0_17 = arith.constant 0 : index
    %c0_18 = arith.constant 0 : index
    %81 = vector.load %arg1[%c0_17, %c0_18] : memref<16x72xf32, #tpu.memory_space<vmem>>, vector<16x72xf32>
    %cst = arith.constant dense<0.000000e+00> : vector<16x512xf32>
    %82 = tpu.matmul %81, %80, %cst {dimension_numbers = #tpu.dot_dimension_numbers<[1], [0], [0], [1], [0, 0, 1, 1], [], []>} : vector<16x72xf32>, vector<72x512xf32>, vector<16x512xf32> -> vector<16x512xf32>
    %83 = vector.extract_strided_slice %82 {offsets = [0, 0], sizes = [8, 512], strides = [1, 1]} : vector<16x512xf32> to vector<8x512xf32>
    %c0_19 = arith.constant 0 : index
    %c0_20 = arith.constant 0 : index
    %c0_21 = arith.constant 0 : index
    %84 = vector.load %arg3[%c0_19, %c0_20, %c0_21] : memref<6x8x1xf32, #tpu.memory_space<vmem>>, vector<1x8x1xf32>
    %85 = vector.shape_cast %84 : vector<1x8x1xf32> to vector<8x1xf32>
    %c1 = arith.constant 1 : index
    %c0_22 = arith.constant 0 : index
    %c0_23 = arith.constant 0 : index
    %86 = vector.load %arg3[%c1, %c0_22, %c0_23] : memref<6x8x1xf32, #tpu.memory_space<vmem>>, vector<1x8x1xf32>
    %87 = vector.shape_cast %86 : vector<1x8x1xf32> to vector<8x1xf32>
    %cst_24 = arith.constant dense<0.000000e+00> : vector<8xf32>
    %88 = vector.multi_reduction <add>, %83, %cst_24 [1] : vector<8x512xf32> to vector<8xf32>
    %89 = vector.shape_cast %88 : vector<8xf32> to vector<8x1xf32>
    %cst_25 = arith.constant 0.001953125 : f32
    %90 = vector.broadcast %cst_25 : f32 to vector<8x1xf32>
    %91 = arith.mulf %89, %90 : vector<8x1xf32>
    %92 = arith.mulf %83, %83 : vector<8x512xf32>
    %cst_26 = arith.constant dense<0.000000e+00> : vector<8xf32>
    %93 = vector.multi_reduction <add>, %92, %cst_26 [1] : vector<8x512xf32> to vector<8xf32>
    %94 = vector.shape_cast %93 : vector<8xf32> to vector<8x1xf32>
    %cst_27 = arith.constant 0.001953125 : f32
    %95 = vector.broadcast %cst_27 : f32 to vector<8x1xf32>
    %96 = arith.mulf %94, %95 : vector<8x1xf32>
    %97 = arith.mulf %91, %91 : vector<8x1xf32>
    %98 = arith.subf %96, %97 : vector<8x1xf32>
    %cst_28 = arith.constant 9.99999974E-6 : f32
    %99 = vector.broadcast %cst_28 : f32 to vector<8x1xf32>
    %100 = arith.addf %98, %99 : vector<8x1xf32>
    %101 = math.rsqrt %100 : vector<8x1xf32>
    %102 = arith.mulf %85, %101 : vector<8x1xf32>
    %103 = arith.mulf %91, %102 : vector<8x1xf32>
    %104 = arith.subf %87, %103 : vector<8x1xf32>
    %105 = vector.broadcast %102 : vector<8x1xf32> to vector<8x512xf32>
    %106 = arith.mulf %83, %105 : vector<8x512xf32>
    %107 = vector.broadcast %104 : vector<8x1xf32> to vector<8x512xf32>
    %108 = arith.addf %106, %107 : vector<8x512xf32>
    %cst_29 = arith.constant 0.000000e+00 : f32
    %109 = vector.broadcast %cst_29 : f32 to vector<8x512xf32>
    %110 = arith.maximumf %108, %109 : vector<8x512xf32>
    %111 = vector.extract_strided_slice %82 {offsets = [8, 0], sizes = [8, 512], strides = [1, 1]} : vector<16x512xf32> to vector<8x512xf32>
    %c4 = arith.constant 4 : index
    %c0_30 = arith.constant 0 : index
    %c0_31 = arith.constant 0 : index
    %112 = vector.load %arg3[%c4, %c0_30, %c0_31] : memref<6x8x1xf32, #tpu.memory_space<vmem>>, vector<1x8x1xf32>
    %113 = vector.shape_cast %112 : vector<1x8x1xf32> to vector<8x1xf32>
    %c5 = arith.constant 5 : index
    %c0_32 = arith.constant 0 : index
    %c0_33 = arith.constant 0 : index
    %114 = vector.load %arg3[%c5, %c0_32, %c0_33] : memref<6x8x1xf32, #tpu.memory_space<vmem>>, vector<1x8x1xf32>
    %115 = vector.shape_cast %114 : vector<1x8x1xf32> to vector<8x1xf32>
    %cst_34 = arith.constant dense<0.000000e+00> : vector<8xf32>
    %116 = vector.multi_reduction <add>, %111, %cst_34 [1] : vector<8x512xf32> to vector<8xf32>
    %117 = vector.shape_cast %116 : vector<8xf32> to vector<8x1xf32>
    %cst_35 = arith.constant 0.001953125 : f32
    %118 = vector.broadcast %cst_35 : f32 to vector<8x1xf32>
    %119 = arith.mulf %117, %118 : vector<8x1xf32>
    %120 = arith.mulf %111, %111 : vector<8x512xf32>
    %cst_36 = arith.constant dense<0.000000e+00> : vector<8xf32>
    %121 = vector.multi_reduction <add>, %120, %cst_36 [1] : vector<8x512xf32> to vector<8xf32>
    %122 = vector.shape_cast %121 : vector<8xf32> to vector<8x1xf32>
    %cst_37 = arith.constant 0.001953125 : f32
    %123 = vector.broadcast %cst_37 : f32 to vector<8x1xf32>
    %124 = arith.mulf %122, %123 : vector<8x1xf32>
    %125 = arith.mulf %119, %119 : vector<8x1xf32>
    %126 = arith.subf %124, %125 : vector<8x1xf32>
    %cst_38 = arith.constant 9.99999974E-6 : f32
    %127 = vector.broadcast %cst_38 : f32 to vector<8x1xf32>
    %128 = arith.addf %126, %127 : vector<8x1xf32>
    %129 = math.rsqrt %128 : vector<8x1xf32>
    %130 = arith.mulf %113, %129 : vector<8x1xf32>
    %131 = arith.mulf %119, %130 : vector<8x1xf32>
    %132 = arith.subf %115, %131 : vector<8x1xf32>
    %133 = vector.broadcast %130 : vector<8x1xf32> to vector<8x512xf32>
    %134 = arith.mulf %111, %133 : vector<8x512xf32>
    %135 = vector.broadcast %132 : vector<8x1xf32> to vector<8x512xf32>
    %136 = arith.addf %134, %135 : vector<8x512xf32>
    %c17_i32_39 = arith.constant 17 : i32
    %137 = tpu.dynamic_rotate %110 by %c17_i32_39 dim 1 : vector<8x512xf32>, i32 -> vector<8x512xf32>
    %138 = arith.mulf %17, %39 : vector<1x512xf32>
    %139 = vector.broadcast %138 : vector<1x512xf32> to vector<8x512xf32>
    %140 = arith.mulf %137, %139 : vector<8x512xf32>
    %c16_i32_40 = arith.constant 16 : i32
    %141 = tpu.dynamic_rotate %110 by %c16_i32_40 dim 1 : vector<8x512xf32>, i32 -> vector<8x512xf32>
    %142 = vector.broadcast %17 : vector<1x512xf32> to vector<8x512xf32>
    %143 = arith.mulf %141, %142 : vector<8x512xf32>
    %c15_i32_41 = arith.constant 15 : i32
    %144 = tpu.dynamic_rotate %110 by %c15_i32_41 dim 1 : vector<8x512xf32>, i32 -> vector<8x512xf32>
    %145 = arith.mulf %17, %50 : vector<1x512xf32>
    %146 = vector.broadcast %145 : vector<1x512xf32> to vector<8x512xf32>
    %147 = arith.mulf %144, %146 : vector<8x512xf32>
    %c1_i32_42 = arith.constant 1 : i32
    %148 = tpu.dynamic_rotate %110 by %c1_i32_42 dim 1 : vector<8x512xf32>, i32 -> vector<8x512xf32>
    %149 = vector.broadcast %39 : vector<1x512xf32> to vector<8x512xf32>
    %150 = arith.mulf %148, %149 : vector<8x512xf32>
    %c511_i32_43 = arith.constant 511 : i32
    %151 = tpu.dynamic_rotate %110 by %c511_i32_43 dim 1 : vector<8x512xf32>, i32 -> vector<8x512xf32>
    %152 = vector.broadcast %50 : vector<1x512xf32> to vector<8x512xf32>
    %153 = arith.mulf %151, %152 : vector<8x512xf32>
    %c497_i32_44 = arith.constant 497 : i32
    %154 = tpu.dynamic_rotate %110 by %c497_i32_44 dim 1 : vector<8x512xf32>, i32 -> vector<8x512xf32>
    %155 = arith.mulf %28, %39 : vector<1x512xf32>
    %156 = vector.broadcast %155 : vector<1x512xf32> to vector<8x512xf32>
    %157 = arith.mulf %154, %156 : vector<8x512xf32>
    %c496_i32_45 = arith.constant 496 : i32
    %158 = tpu.dynamic_rotate %110 by %c496_i32_45 dim 1 : vector<8x512xf32>, i32 -> vector<8x512xf32>
    %159 = vector.broadcast %28 : vector<1x512xf32> to vector<8x512xf32>
    %160 = arith.mulf %158, %159 : vector<8x512xf32>
    %c495_i32_46 = arith.constant 495 : i32
    %161 = tpu.dynamic_rotate %110 by %c495_i32_46 dim 1 : vector<8x512xf32>, i32 -> vector<8x512xf32>
    %162 = arith.mulf %28, %50 : vector<1x512xf32>
    %163 = vector.broadcast %162 : vector<1x512xf32> to vector<8x512xf32>
    %164 = arith.mulf %161, %163 : vector<8x512xf32>
    %165 = tpu.concatenate %140, %143, %147, %150, %110, %153, %157, %160, %164 in 0 : vector<8x512xf32>, vector<8x512xf32>, vector<8x512xf32>, vector<8x512xf32>, vector<8x512xf32>, vector<8x512xf32>, vector<8x512xf32>, vector<8x512xf32>, vector<8x512xf32> -> vector<72x512xf32>
    %c0_47 = arith.constant 0 : index
    %c0_48 = arith.constant 0 : index
    %166 = vector.load %arg2[%c0_47, %c0_48] : memref<8x72xf32, #tpu.memory_space<vmem>>, vector<8x72xf32>
    %cst_49 = arith.constant dense<0.000000e+00> : vector<8x512xf32>
    %167 = tpu.matmul %166, %165, %cst_49 {dimension_numbers = #tpu.dot_dimension_numbers<[1], [0], [0], [1], [0, 0, 1, 1], [], []>} : vector<8x72xf32>, vector<72x512xf32>, vector<8x512xf32> -> vector<8x512xf32>
    %c2 = arith.constant 2 : index
    %c0_50 = arith.constant 0 : index
    %c0_51 = arith.constant 0 : index
    %168 = vector.load %arg3[%c2, %c0_50, %c0_51] : memref<6x8x1xf32, #tpu.memory_space<vmem>>, vector<1x8x1xf32>
    %169 = vector.shape_cast %168 : vector<1x8x1xf32> to vector<8x1xf32>
    %c3 = arith.constant 3 : index
    %c0_52 = arith.constant 0 : index
    %c0_53 = arith.constant 0 : index
    %170 = vector.load %arg3[%c3, %c0_52, %c0_53] : memref<6x8x1xf32, #tpu.memory_space<vmem>>, vector<1x8x1xf32>
    %171 = vector.shape_cast %170 : vector<1x8x1xf32> to vector<8x1xf32>
    %cst_54 = arith.constant dense<0.000000e+00> : vector<8xf32>
    %172 = vector.multi_reduction <add>, %167, %cst_54 [1] : vector<8x512xf32> to vector<8xf32>
    %173 = vector.shape_cast %172 : vector<8xf32> to vector<8x1xf32>
    %cst_55 = arith.constant 0.001953125 : f32
    %174 = vector.broadcast %cst_55 : f32 to vector<8x1xf32>
    %175 = arith.mulf %173, %174 : vector<8x1xf32>
    %176 = arith.mulf %167, %167 : vector<8x512xf32>
    %cst_56 = arith.constant dense<0.000000e+00> : vector<8xf32>
    %177 = vector.multi_reduction <add>, %176, %cst_56 [1] : vector<8x512xf32> to vector<8xf32>
    %178 = vector.shape_cast %177 : vector<8xf32> to vector<8x1xf32>
    %cst_57 = arith.constant 0.001953125 : f32
    %179 = vector.broadcast %cst_57 : f32 to vector<8x1xf32>
    %180 = arith.mulf %178, %179 : vector<8x1xf32>
    %181 = arith.mulf %175, %175 : vector<8x1xf32>
    %182 = arith.subf %180, %181 : vector<8x1xf32>
    %cst_58 = arith.constant 9.99999974E-6 : f32
    %183 = vector.broadcast %cst_58 : f32 to vector<8x1xf32>
    %184 = arith.addf %182, %183 : vector<8x1xf32>
    %185 = math.rsqrt %184 : vector<8x1xf32>
    %186 = arith.mulf %169, %185 : vector<8x1xf32>
    %187 = arith.mulf %175, %186 : vector<8x1xf32>
    %188 = arith.subf %171, %187 : vector<8x1xf32>
    %189 = vector.broadcast %186 : vector<8x1xf32> to vector<8x512xf32>
    %190 = arith.mulf %167, %189 : vector<8x512xf32>
    %191 = vector.broadcast %188 : vector<8x1xf32> to vector<8x512xf32>
    %192 = arith.addf %190, %191 : vector<8x512xf32>
    %193 = arith.addf %192, %136 : vector<8x512xf32>
    %cst_59 = arith.constant 0.000000e+00 : f32
    %194 = vector.broadcast %cst_59 : f32 to vector<8x512xf32>
    %195 = arith.maximumf %193, %194 : vector<8x512xf32>
    %c0_60 = arith.constant 0 : index
    %c0_61 = arith.constant 0 : index
    %196 = vector.load %arg4[%c0_60, %c0_61] : memref<8x512xf32, #tpu.memory_space<vmem>>, vector<8x512xf32>
    tpu.vector_store %arg4[%c0_60, %c0_61], %195 {strides = array<i32>} : memref<8x512xf32, #tpu.memory_space<vmem>>, vector<8x512xf32>,
    return
  }
}

</mosaic_0001>

<bundles_post_ra>
// kernel: resblock_forward.1
= control target key start
LH: loop header
LB: loop body
LE: loop exit
PB: predicated region body
PF: predicated region fallthrough
CT: control target
= control target key end

     0   :  { %v986_v1 = vmov 0.0   ;;  %s987_s17 = smov 16   ;;  %s988_s18 = smov 17   ;;  %v17_v5 = vlaneseq  ;;  %s1615_s0 = inlined_call_operand.vmem [shape: f32[8,512], index: 0, kind: input, shape index: {}]   ;;  %s1616_s1 = inlined_call_operand.vmem [shape: f32[16,72], index: 1, kind: input, shape index: {}]   ;;  %s1617_s3 = inlined_call_operand.vmem [shape: f32[6,8,1], index: 3, kind: input, shape index: {}]   ;;  %s1618_s2 = inlined_call_operand.vmem [shape: f32[8,72], index: 2, kind: input, shape index: {}]   ;;  %s1619_s4 = inlined_call_operand.vmem [shape: f32[8,512], index: 4, kind: output, shape index: {}]  }
   0x1   :  { %v1024_v0 = vld [vmem:[%s1615_s0] sm:$0xff]  ;;  %359 = vmatprep.mubr.f32.mxu0 %v986_v1  ;;  %436 = vmatprep.mubr.f32.mxu1 %v986_v1  ;;  %v1035_v2 = vld [vmem:[%s1615_s0 + $0x8] sm:$0xff]  ;;  %v1044_v3 = vld [vmem:[%s1615_s0 + $0x18] sm:$0xff]  ;;  %s989_s25 = smov 15   ;;  %s990_s26 = smov 1  }
   0x2   :  { %155 = vrot.lane.b32.xlu1 %v1024_v0, %s987_s17  ;;  %134 = vrot.lane.b32.xlu0 %v1024_v0, %s988_s18  ;;  %v1053_v4 = vld [vmem:[%s1615_s0 + $0x10] sm:$0xff]  ;;  %s991_s0 = smov 127   ;;  %s992_s27 = smov 113   ;;  %v1107_v6 = vand.u32 127, %v17_v5 }
   0x3   :  { %s993_s28 = smov 112   ;;  %s994_s29 = smov 111  }
   0x4   :  { %v19_v7 = vadd.s32 128, %v1107_v6  ;;  %v1111_v9 = vadd.s32 256, %v1107_v6  ;;  %v26_v10 = vshra.s32 %v1107_v6, 4  ;;  %v1117_v12 = vadd.s32 384, %v1107_v6 }
   0x5   :  { %v22_v18 = vand.u32 15, %v1107_v6  ;;  %vm163_vm12 = vcmp.lt.s32.totalorder %v1107_v6, 16  ;;  %vm142_vm13 = vcmp.lt.s32.totalorder %v1107_v6, 17 }
   0x6   :  { %157 = vrot.lane.b32.xlu1 %v1035_v2, %s987_s17  ;;  %136 = vrot.lane.b32.xlu0 %v1035_v2, %s988_s18  ;;  %v27_v8 = vshra.s32 %v19_v7, 4  ;;  %v23_v13 = vand.u32 15, %v19_v7  ;;  %v28_v14 = vshra.s32 %v1111_v9, 4  ;;  %v1120_v15 = vand.u32 15, %v26_v10 }
   0x7   :  { %v29_v17 = vshra.s32 %v1117_v12, 4  ;;  %v82_v23 = vadd.s32 4294967295, %v22_v18  ;;  %v24_v25 = vand.u32 15, %v1111_v9  ;;  %v25_v26 = vand.u32 15, %v1117_v12 }
   0x8   :  { %v1114_v11 = vand.u32 15, %v27_v8  ;;  %v83_v19 = vadd.s32 4294967295, %v23_v13  ;;  %v1125_v20 = vand.u32 15, %v28_v14  ;;  %v34_v21 = vadd.s32 4294967295, %v1120_v15 }
   0x9   :  { %v1128_v22 = vand.u32 15, %v29_v17  ;;  %vm86_vm6 = vcmp.ge.s32.totalorder %v82_v23, 0  ;;  %v84_v32 = vadd.s32 4294967295, %v24_v25  ;;  %v85_v33 = vadd.s32 4294967295, %v25_v26 }
   0xa   :  { %161 = vrot.lane.b32.xlu1 %v1044_v3, %s987_s17  ;;  %140 = vrot.lane.b32.xlu0 %v1044_v3, %s988_s18  ;;  %v35_v16 = vadd.s32 4294967295, %v1114_v11  ;;  %vm87_vm3 = vcmp.ge.s32.totalorder %v83_v19, 0  ;;  %v36_v24 = vadd.s32 4294967295, %v1125_v20  ;;  %vm38_vm4 = vcmp.ge.s32.totalorder %v34_v21, 0 }
   0xb   :  { %vm42_vm5 = vcmp.lt.s32.totalorder %v34_v21, 16  ;;  %v37_v27 = vadd.s32 4294967295, %v1128_v22  ;;  %v1138_v29 = vsel %vm87_vm3, 1.0, %v986_v1  ;;  %v1155_v36 = vsel %vm86_vm6, 1.0, %v986_v1 }
   0xc   :  { %vm39_vm0 = vcmp.ge.s32.totalorder %v35_v16, 0  ;;  %vm43_vm1 = vcmp.lt.s32.totalorder %v35_v16, 16  ;;  %vm46_vm7 = vmand %vm38_vm4, %vm42_vm5  ;;  %vm40_vm8 = vcmp.ge.s32.totalorder %v36_v24, 0  ;;  %vm44_vm9 = vcmp.lt.s32.totalorder %v36_v24, 16 }
   0xd   :  { %vm47_vm2 = vmand %vm39_vm0, %vm43_vm1  ;;  %vm41_vm10 = vcmp.ge.s32.totalorder %v37_v27, 0  ;;  %vm45_vm11 = vcmp.lt.s32.totalorder %v37_v27, 16  ;;  %v1151_v35 = vsel %vm46_vm7, 1.0, %v986_v1  ;;  %vm88_vm15 = vcmp.ge.s32.totalorder %v84_v32, 0 }
   0xe   :  { %159 = vrot.lane.b32.xlu1 %v1053_v4, %s987_s17  ;;  %138 = vrot.lane.b32.xlu0 %v1053_v4, %s988_s18  ;;  %v1135_v28 = vsel %vm47_vm2, 1.0, %v986_v1  ;;  %vm48_vm14 = vmand %vm40_vm8, %vm44_vm9  ;;  %vm89_vm1 = vcmp.ge.s32.totalorder %v85_v33, 0  ;;  %v1163_v41 = vmul.f32 %v1155_v36, %v1151_v35  ;;  %v1171_v45 = vsel %vm88_vm15, 1.0, %v986_v1 }
   0xf   :  { %v1148_v34 = vmul.f32 %v1138_v29, %v1135_v28  ;;  %vm49_vm0 = vmand %vm41_vm10, %vm45_vm11  ;;  %v1168_v44 = vsel %vm48_vm14, 1.0, %v986_v1  ;;  %v1177_v47 = vsel %vm89_vm1, 1.0, %v986_v1  ;;  %v107_v51 = vadd.s32 1, %v23_v13 }
  0x10   :  { %v1174_v46 = vsel %vm49_vm0, 1.0, %v986_v1  ;;  %v1187_v56 = vmul.f32 %v1171_v45, %v1168_v44  ;;  %v106_v58 = vadd.s32 1, %v22_v18  ;;  %vm180_vm3 = vcmp.lt.s32.totalorder %v1107_v6, 15 }
  0x11   :  { %v1191_v57 = vmul.f32 %v1177_v47, %v1174_v46  ;;  %vm115_vm2 = vcmp.lt.s32.totalorder %v107_v51, 16  ;;  %v108_v23 = vadd.s32 1, %v24_v25  ;;  %v109_v24 = vadd.s32 1, %v25_v26 }
  0x12   :  { %174 = vrot.lane.b32.xlu1 %v1035_v2, %s989_s25  ;;  %172 = vrot.lane.b32.xlu0 %v1024_v0, %s989_s25  ;;  %v1206_v16 = vsel %vm115_vm2, 1.0, %v986_v1  ;;  %vm114_vm4 = vcmp.lt.s32.totalorder %v106_v58, 16  ;;  %vm201_vm5 = vcmp.lt.s32.totalorder %v1107_v6, 1  ;;  %vm218_vm8 = vcmp.lt.s32.totalorder %v1107_v6, 127 }
  0x13   :  { %v1215_v27 = vmul.f32 %v1206_v16, %v1135_v28  ;;  %vm116_vm6 = vcmp.lt.s32.totalorder %v108_v23, 16  ;;  %vm117_vm7 = vcmp.lt.s32.totalorder %v109_v24, 16  ;;  %v59_v58 = vadd.s32 1, %v1114_v11 }
  0x14   :  { %vm235_vm0 = vcmp.lt.s32.totalorder %v1107_v6, 113 }
  0x15   :  { %vm63_vm9 = vcmp.ge.s32.totalorder %v59_v58, 0  ;;  %vm67_vm10 = vcmp.lt.s32.totalorder %v59_v58, 16 }
  0x16   :  { %195 = vrot.lane.b32.xlu1 %v1035_v2, %s990_s26  ;;  %193 = vrot.lane.b32.xlu0 %v1024_v0, %s990_s26  ;;  %vm71_vm11 = vmand %vm63_vm9, %vm67_vm10  ;;  %vm256_vm9 = vcmp.lt.s32.totalorder %v1107_v6, 112 }
  0x1a   :  { %199 = vrot.lane.b32.xlu1 %v1044_v3, %s990_s26  ;;  %178 = vrot.lane.b32.xlu0 %v1044_v3, %s989_s25 }
  0x1e   :  { %197 = vrot.lane.b32.xlu1 %v1053_v4, %s990_s26  ;;  %176 = vrot.lane.b32.xlu0 %v1053_v4, %s989_s25 }
  0x22   :  { %214 = vrot.lane.b32.xlu1 %v1053_v4, %s991_s0  ;;  %212 = vrot.lane.b32.xlu0 %v1035_v2, %s991_s0 }
  0x26   :  { %216 = vrot.lane.b32.xlu1 %v1044_v3, %s991_s0  ;;  %210 = vrot.lane.b32.xlu0 %v1024_v0, %s991_s0 }
  0x2a   :  { %231 = vrot.lane.b32.xlu1 %v1053_v4, %s992_s27  ;;  %229 = vrot.lane.b32.xlu0 %v1035_v2, %s992_s27 }
  0x2e   :  { %252 = vrot.lane.b32.xlu1 %v1053_v4, %s993_s28  ;;  %250 = vrot.lane.b32.xlu0 %v1035_v2, %s993_s28 }
  0x32   :  { %248 = vrot.lane.b32.xlu1 %v1024_v0, %s993_s28  ;;  %227 = vrot.lane.b32.xlu0 %v1024_v0, %s992_s27 }
  0x36   :  { %254 = vrot.lane.b32.xlu1 %v1044_v3, %s993_s28  ;;  %233 = vrot.lane.b32.xlu0 %v1044_v3, %s992_s27 }
  0x3a   :  { %269 = vrot.lane.b32.xlu1 %v1053_v4, %s994_s29  ;;  %267 = vrot.lane.b32.xlu0 %v1035_v2, %s994_s29 }
  0x3e   :  { %271 = vrot.lane.b32.xlu1 %v1044_v3, %s994_s29  ;;  %265 = vrot.lane.b32.xlu0 %v1024_v0, %s994_s29 }
  0x74   :  { %v156_v30 = vpop.permute.xlu1 %155  ;;  %v135_v31 = vpop.permute.xlu0 %134 }
  0x78   :  { %v158_v37 = vpop.permute.xlu1 %157  ;;  %v137_v38 = vpop.permute.xlu0 %136 }
  0x79   :  { %v166_v39 = vsel %vm163_vm12, %v156_v30, %v158_v37  ;;  %v145_v40 = vsel %vm142_vm13, %v135_v31, %v137_v38 }
  0x7a   :  { %v152_v42 = vmul.f32 %v1148_v34, %v145_v40  ;;  %v169_v43 = vmul.f32 %v1135_v28, %v166_v39 }
  0x7c   :  { %v162_v48 = vpop.permute.xlu1 %161  ;;  %v141_v49 = vpop.permute.xlu0 %140  ;;  %v904_v50 = vpack.c.bf16 %v169_v43, %v152_v42 }
  0x7d   :  { %v167_v52 = vsel %vm163_vm12, %v162_v48, %v156_v30  ;;  %v146_v53 = vsel %vm142_vm13, %v141_v49, %v135_v31  ;;  %v1221_v31 = vsel %vm114_vm4, 1.0, %v986_v1 }
  0x7e   :  { %v168_v54 = vmul.f32 %v1151_v35, %v167_v52  ;;  %v151_v55 = vmul.f32 %v1163_v41, %v146_v53  ;;  %905 = vmatprep.subr.bf16.mxu0 %v904_v50  ;;  %v1229_v33 = vmul.f32 %v1221_v31, %v1151_v35 }
  0x80   :  { %v160_v59 = vpop.permute.xlu1 %159  ;;  %v139_v60 = vpop.permute.xlu0 %138  ;;  %v906_v61 = vpack.c.bf16 %v168_v54, %v151_v55 }
  0x81   :  { %v164_v62 = vsel %vm163_vm12, %v160_v59, %v162_v48  ;;  %v165_v63 = vsel %vm163_vm12, %v158_v37, %v160_v59  ;;  %v143_v5 = vsel %vm142_vm13, %v139_v60, %v141_v49  ;;  %v144_v7 = vsel %vm142_vm13, %v137_v38, %v139_v60 }
  0x82   :  { %v170_v8 = vmul.f32 %v1168_v44, %v165_v63  ;;  %v153_v10 = vmul.f32 %v1187_v56, %v144_v7  ;;  %907 = vmatpush1.bf16.msra.mxu0 %v906_v61  ;;  %v154_v13 = vmul.f32 %v1191_v57, %v143_v5  ;;  %v171_v14 = vmul.f32 %v1174_v46, %v164_v62 }
  0x83   :  { %v1232_v37 = vsel %vm116_vm6, 1.0, %v986_v1  ;;  %v1235_v38 = vsel %vm117_vm7, 1.0, %v986_v1 }
  0x84   :  { %v175_v17 = vpop.permute.xlu1 %174  ;;  %v173_v18 = vpop.permute.xlu0 %172  ;;  %v920_v19 = vpack.c.bf16 %v171_v14, %v154_v13  ;;  %v922_v21 = vpack.c.bf16 %v170_v8, %v153_v10  ;;  %v1245_v51 = vmul.f32 %v1232_v37, %v1168_v44  ;;  %v1249_v52 = vmul.f32 %v1235_v38, %v1174_v46 }
  0x85   :  { %v183_v30 = vsel %vm180_vm3, %v173_v18, %v175_v17 }
  0x86   :  { %921 = vmatprep.subr.bf16.mxu1 %v920_v19  ;;  %v190_v25 = vmul.f32 %v1215_v27, %v183_v30 }
  0x87   :  { %923 = vmatpush1.bf16.msra.mxu1 %v922_v21  ;;  %v60_v21 = vadd.s32 1, %v1125_v20 }
  0x88   :  { %v196_v32 = vpop.permute.xlu1 %195  ;;  %v194_v9 = vpop.permute.xlu0 %193 }
  0x89   :  { %v204_v12 = vsel %vm201_vm5, %v194_v9, %v196_v32  ;;  %vm64_vm1 = vcmp.ge.s32.totalorder %v60_v21, 0  ;;  %vm68_vm4 = vcmp.lt.s32.totalorder %v60_v21, 16 }
  0x8a   :  { %v207_v26 = vmul.f32 %v1138_v29, %v204_v12  ;;  %v61_v12 = vadd.s32 1, %v1128_v22  ;;  %vm72_vm10 = vmand %vm64_vm1, %vm68_vm4 }
  0x8b   :  { %v1310_v58 = vsel %vm72_vm10, 1.0, %v986_v1 }
  0x8c   :  { %v200_v39 = vpop.permute.xlu1 %199  ;;  %v179_v40 = vpop.permute.xlu0 %178  ;;  %v908_v42 = vpack.c.bf16 %v207_v26, %v190_v25  ;;  %v1282_v26 = vsel %vm71_vm11, 1.0, %v986_v1  ;;  %vm65_vm6 = vcmp.ge.s32.totalorder %v61_v12, 0  ;;  %vm69_vm7 = vcmp.lt.s32.totalorder %v61_v12, 16 }
  0x8d   :  { %v205_v43 = vsel %vm201_vm5, %v200_v39, %v194_v9  ;;  %v184_v48 = vsel %vm180_vm3, %v179_v40, %v173_v18  ;;  %v58_v18 = vadd.s32 1, %v1120_v15  ;;  %vm73_vm11 = vmand %vm65_vm6, %vm69_vm7 }
  0x8e   :  { %v206_v49 = vmul.f32 %v1155_v36, %v205_v43  ;;  %v189_v50 = vmul.f32 %v1229_v33, %v184_v48  ;;  %909 = vmatprep.subr.bf16.mxu0 %v908_v42  ;;  %v1292_v48 = vmul.f32 %v1138_v29, %v1282_v26 }
  0x8f   :  { %vm62_vm14 = vcmp.ge.s32.totalorder %v58_v18, 0  ;;  %vm66_vm15 = vcmp.lt.s32.totalorder %v58_v18, 16 }
  0x90   :  { %v198_v53 = vpop.permute.xlu1 %197  ;;  %v177_v54 = vpop.permute.xlu0 %176  ;;  %v910_v55 = vpack.c.bf16 %v206_v49, %v189_v50  ;;  %vm70_vm2 = vmand %vm62_vm14, %vm66_vm15  ;;  %vm273_vm14 = vcmp.lt.s32.totalorder %v1107_v6, 111  ;;  %vm288_vm15 = vcmask 588800  }
  0x91   :  { %v202_v59 = vsel %vm201_vm5, %v198_v53, %v200_v39  ;;  %v203_v60 = vsel %vm201_vm5, %v196_v32, %v198_v53  ;;  %v181_v61 = vsel %vm180_vm3, %v177_v54, %v179_v40  ;;  %v182_v62 = vsel %vm180_vm3, %v175_v17, %v177_v54 }
  0x92   :  { %v208_v63 = vmul.f32 %v1171_v45, %v203_v60  ;;  %v209_v5 = vmul.f32 %v1177_v47, %v202_v59  ;;  %v191_v7 = vmul.f32 %v1245_v51, %v182_v62  ;;  %v192_v11 = vmul.f32 %v1249_v52, %v181_v61  ;;  %911 = vmatpush1.bf16.msra.mxu0 %v910_v55 }
  0x93   :  { %v1313_v59 = vsel %vm73_vm11, 1.0, %v986_v1 }
  0x94   :  { %v215_v8 = vpop.permute.xlu1 %214  ;;  %v213_v10 = vpop.permute.xlu0 %212  ;;  %v924_v13 = vpack.c.bf16 %v209_v5, %v192_v11  ;;  %v926_v14 = vpack.c.bf16 %v208_v63, %v191_v7 }
  0x95   :  { %v220_v19 = vsel %vm218_vm8, %v213_v10, %v215_v8 }
  0x96   :  { %v224_v17 = vmul.f32 %v1206_v16, %v220_v19  ;;  %925 = vmatprep.subr.bf16.mxu1 %v924_v13  ;;  %v1332_v19 = vmul.f32 %v1206_v16, %v1282_v26 }
  0x97   :  { %927 = vmatpush1.bf16.msra.mxu1 %v926_v14 }
  0x98   :  { %v217_v23 = vpop.permute.xlu1 %216  ;;  %v211_v24 = vpop.permute.xlu0 %210  ;;  %v912_v30 = vpack.c.bf16 %v224_v17, %v1035_v2 }
  0x99   :  { %v219_v15 = vsel %vm218_vm8, %v215_v8, %v217_v23  ;;  %v221_v32 = vsel %vm218_vm8, %v211_v24, %v213_v10  ;;  %v222_v9 = vsel %vm218_vm8, %v217_v23, %v211_v24  ;;  %v1323_v8 = vmul.f32 %v1171_v45, %v1310_v58 }
  0x9a   :  { %v225_v20 = vmul.f32 %v1232_v37, %v219_v15  ;;  %v223_v25 = vmul.f32 %v1221_v31, %v221_v32  ;;  %v226_v2 = vmul.f32 %v1235_v38, %v222_v9  ;;  %913 = vmatprep.subr.bf16.mxu0 %v912_v30  ;;  %v1327_v10 = vmul.f32 %v1177_v47, %v1313_v59 }
  0x9c   :  { %v232_v39 = vpop.permute.xlu1 %231  ;;  %v230_v40 = vpop.permute.xlu0 %229  ;;  %v914_v42 = vpack.c.bf16 %v223_v25, %v1024_v0  ;;  %v928_v43 = vpack.c.bf16 %v226_v2, %v1044_v3  ;;  %v930_v22 = vpack.c.bf16 %v225_v20, %v1053_v4  ;;  %v1298_v3 = vsel %vm70_vm2, 1.0, %v986_v1 }
  0x9d   :  { %v237_v0 = vsel %vm235_vm0, %v230_v40, %v232_v39  ;;  %v1307_v55 = vmul.f32 %v1155_v36, %v1298_v3 }
  0x9e   :  { %915 = vmatpush1.bf16.msra.mxu0 %v914_v42  ;;  %929 = vmatprep.subr.bf16.mxu1 %v928_v43  ;;  %v245_v53 = vmul.f32 %v1292_v48, %v237_v0  ;;  %v1351_v42 = vmul.f32 %v1232_v37, %v1310_v58  ;;  %v1355_v43 = vmul.f32 %v1221_v31, %v1298_v3 }
  0x9f   :  { %931 = vmatpush1.bf16.msra.mxu1 %v930_v22  ;;  %v1359_v22 = vmul.f32 %v1235_v38, %v1313_v59 }
  0xa0   :  { %v253_v4 = vpop.permute.xlu1 %252  ;;  %v251_v49 = vpop.permute.xlu0 %250 }
  0xa1   :  { %v258_v50 = vsel %vm256_vm9, %v251_v49, %v253_v4 }
  0xa2   :  { %v262_v54 = vmul.f32 %v1282_v26, %v258_v50 }
  0xa4   :  { %v249_v60 = vpop.permute.xlu1 %248  ;;  %v228_v61 = vpop.permute.xlu0 %227  ;;  %v916_v62 = vpack.c.bf16 %v262_v54, %v245_v53 }
  0xa5   :  { %v259_v63 = vsel %vm256_vm9, %v249_v60, %v251_v49  ;;  %v238_v5 = vsel %vm235_vm0, %v228_v61, %v230_v40 }
  0xa6   :  { %v261_v7 = vmul.f32 %v1298_v3, %v259_v63  ;;  %v244_v11 = vmul.f32 %v1307_v55, %v238_v5  ;;  %917 = vmatprep.subr.bf16.mxu0 %v916_v62  ;;  %v286_v62 = vld [vmem:[%s1616_s1] sm:$0xff] }
  0xa8   :  { %v255_v13 = vpop.permute.xlu1 %254  ;;  %v234_v14 = vpop.permute.xlu0 %233  ;;  %v918_v18 = vpack.c.bf16 %v261_v7, %v244_v11 }
  0xa9   :  { %v257_v17 = vsel %vm256_vm9, %v253_v4, %v255_v13  ;;  %v260_v21 = vsel %vm256_vm9, %v255_v13, %v249_v60  ;;  %v236_v23 = vsel %vm235_vm0, %v232_v39, %v234_v14  ;;  %v239_v24 = vsel %vm235_vm0, %v234_v14, %v228_v61 }
  0xaa   :  { %v263_v30 = vmul.f32 %v1310_v58, %v257_v17  ;;  %v264_v15 = vmul.f32 %v1313_v59, %v260_v21  ;;  %v246_v32 = vmul.f32 %v1323_v8, %v236_v23  ;;  %v247_v9 = vmul.f32 %v1327_v10, %v239_v24  ;;  %919 = vmatpush1.bf16.msra.mxu0 %v918_v18 }
  0xac   :  { %v270_v12 = vpop.permute.xlu1 %269  ;;  %v268_v20 = vpop.permute.xlu0 %267  ;;  %v932_v25 = vpack.c.bf16 %v264_v15, %v247_v9  ;;  %v934_v2 = vpack.c.bf16 %v263_v30, %v246_v32  ;;  %v995_v9 = vmov 0  }
  0xad   :  { %v275_v40 = vsel %vm273_vm14, %v268_v20, %v270_v12  ;;  %978 = vset.pattern.permute.xlu0 %v995_v9  ;;  %979 = vset.pattern.permute.xlu1 %v995_v9 }
  0xae   :  { %v283_v39 = vmul.f32 %v1332_v19, %v275_v40  ;;  %933 = vmatprep.subr.bf16.mxu1 %v932_v25 }
  0xaf   :  { %935 = vmatpush1.bf16.msra.mxu1 %v934_v2 }
  0xb0   :  { %v272_v0 = vpop.permute.xlu1 %271  ;;  %311 = vmatprep.subr.mxu0 %v283_v39  ;;  %v266_v4 = vpop.permute.xlu0 %265 }
  0xb1   :  { %v274_v49 = vsel %vm273_vm14, %v270_v12, %v272_v0  ;;  %v276_v50 = vsel %vm273_vm14, %v266_v4, %v268_v20  ;;  %v277_v53 = vsel %vm273_vm14, %v272_v0, %v266_v4  ;;  %v449_v4 = vld [vmem:[%s1617_s3] sm:$0xff] }
  0xb2   :  { %v284_v54 = vmul.f32 %v1351_v42, %v274_v49  ;;  %v282_v60 = vmul.f32 %v1355_v43, %v276_v50  ;;  %v285_v61 = vmul.f32 %v1359_v22, %v277_v53  ;;  %v897_v53 = vld [vmem:[%s1617_s3 + $0x8] sm:$0xff] }
  0xb4   :  { %312 = vmatpush1.msra.mxu0 %v282_v60  ;;  %388 = vmatprep.subr.mxu1 %v285_v61  ;;  %v287_v61 = vld [vmem:[%s1616_s1 + $0x8] sm:$0xff] }
  0xb5   :  { %893 = vmatmul.mubr.msk.f32.vlgmr.msra.gmra.mrb[0].mxu0 %vm288_vm15, %v286_v62  ;;  %389 = vmatpush1.msra.mxu1 %v284_v54 }
  0xb6   :  { %895 = vmatmul.mubr.msk.f32.vlgmr.msra.gmra.mrb[0].mxu1 %vm288_vm15, %v286_v62  ;;  %365 = vmatprep.mubr.f32.mxu0 %v986_v1 }
  0xb7   :  { %442 = vmatprep.mubr.f32.mxu1 %v986_v1 }
  0xb9   :  { %894 = vmatmul.mubr.msk.f32.gmra.mrb[2].mxu0 %vm288_vm15, %v287_v61 }
  0xba   :  { %896 = vmatmul.mubr.msk.f32.gmra.mrb[2].mxu1 %vm288_vm15, %v287_v61  ;;  %738 = vmatprep.mubr.f32.mxu0 %v986_v1 }
  0xbb   :  { %809 = vmatprep.mubr.f32.mxu1 %v986_v1 }
 0x188   :  { %v361_v63 = vpop.f32.mrb[0].mxu0 }
 0x189   :  { %v458_v5 = vmul.f32 %v361_v63, %v361_v63  ;;  %v363_v7 = vpop.f32.mrb[1].mxu0  ;;  %v438_v11 = vpop.f32.mrb[0].mxu1 }
 0x18a   :  { %v452_v13 = vadd.f32 %v363_v7, %v361_v63  ;;  %v459_v14 = vmul.f32 %v363_v7, %v363_v7  ;;  %v460_v18 = vmul.f32 %v438_v11, %v438_v11  ;;  %v440_v17 = vpop.f32.mrb[1].mxu1 }
 0x18b   :  { %v461_v30 = vmul.f32 %v440_v17, %v440_v17 }
 0x18c   :  { %v453_v21 = vadd.f32 %v452_v13, %v438_v11  ;;  %v462_v23 = vadd.f32 %v459_v14, %v458_v5 }
 0x18e   :  { %v454_v24 = vadd.f32 %v453_v21, %v440_v17  ;;  %v463_v15 = vadd.f32 %v462_v23, %v460_v18 }
 0x190   :  { %455 = vadd.xlane.f32.xlu0 %v454_v24  ;;  %v464_v32 = vadd.f32 %v463_v15, %v461_v30 }
 0x192   :  { %465 = vadd.xlane.f32.xlu1 %v464_v32 }
 0x21d   :  { %v456_v12 = vpop.xlane.xlu0 %455 }
 0x21e   :  { %v457_v20 = vmul.f32 0.001953125, %v456_v12 }
 0x21f   :  { %v466_v25 = vpop.xlane.xlu1 %465 }
 0x220   :  { %v468_v2 = vmul.f32 %v457_v20, %v457_v20  ;;  %v467_v40 = vmul.f32 0.001953125, %v466_v25 }
 0x222   :  { %v469_v39 = vsub.f32 %v467_v40, %v468_v2  ;;  %v1462_v2 = vpop.f32.mrb[2].mxu0  ;;  %v1464_v40 = vpop.f32.mrb[2].mxu1 }
 0x223   :  { %1622 = vst [vmem:[#allocation2_spill] sm:$0xff] %v1462_v2  ;;  %v509_v61 = vmul.f32 %v1464_v40, %v1464_v40 }
 0x224   :  { %v470_v0 = vadd.f32 1e-05, %v469_v39 }
 0x226   :  { %980 = vrsqrt.f32 %v470_v0  ;;  %v507_v0 = vmul.f32 %v1462_v2, %v1462_v2 }
 0x230   :  { %v981_v49 = vpop.eup %980 }
 0x231   :  { %v472_v50 = vmul.f32 %v981_v49, %v449_v4  ;;  %v1470_v4 = vpop.f32.mrb[3].mxu0  ;;  %v1472_v49 = vpop.f32.mrb[3].mxu1 }
 0x232   :  { %1623 = vst [vmem:[#allocation3_spill] sm:$0xff] %v1470_v4 }
 0x233   :  { %477 = vperm.xlu0 %978, %v472_v50   ;;  %v473_v54 = vmul.f32 %v472_v50, %v457_v20 }
 0x235   :  { %v474_v60 = vsub.f32 %v897_v53, %v473_v54  ;;  %v501_v54 = vadd.f32 %v1470_v4, %v1462_v2 }
 0x237   :  { %486 = vperm.xlu1 %979, %v474_v60   ;;  %v508_v60 = vmul.f32 %v1470_v4, %v1470_v4 }
 0x2b2   :  { %v478_v62 = vpop.permute.xlu0 %477 }
 0x2b3   :  { %v480_v5 = vmul.f32 %v478_v62, %v361_v63  ;;  %v482_v13 = vmul.f32 %v478_v62, %v438_v11  ;;  %v481_v18 = vmul.f32 %v478_v62, %v363_v7  ;;  %v483_v1 = vmul.f32 %v478_v62, %v440_v17 }
 0x2b6   :  { %v487_v14 = vpop.permute.xlu1 %486 }
 0x2b7   :  { %v489_v21 = vadd.f32 %v487_v14, %v480_v5  ;;  %v491_v23 = vadd.f32 %v487_v14, %v482_v13  ;;  %v490_v24 = vadd.f32 %v487_v14, %v481_v18  ;;  %v492_v63 = vadd.f32 %v487_v14, %v483_v1 }
 0x2b8   :  { %v502_v14 = vadd.f32 %v501_v54, %v1464_v40  ;;  %v511_v18 = vadd.f32 %v508_v60, %v507_v0 }
 0x2b9   :  { %v1390_v30 = vmax.f32 %v489_v21, 0.0  ;;  %v1392_v15 = vmax.f32 %v491_v23, 0.0  ;;  %v1398_v32 = vmax.f32 %v490_v24, 0.0  ;;  %v1408_v7 = vmax.f32 %v492_v63, 0.0 }
 0x2ba   :  { %v510_v21 = vmul.f32 %v1472_v49, %v1472_v49  ;;  %v503_v1 = vadd.f32 %v502_v14, %v1472_v49  ;;  %v512_v63 = vadd.f32 %v511_v18, %v509_v61 }
 0x2bb   :  { %546 = vrot.lane.b32.xlu0 %v1392_v15, %s988_s18  ;;  %542 = vrot.lane.b32.xlu1 %v1390_v30, %s988_s18 }
 0x2bf   :  { %574 = vrot.lane.b32.xlu0 %v1390_v30, %s989_s25  ;;  %544 = vrot.lane.b32.xlu1 %v1398_v32, %s988_s18 }
 0x2c3   :  { %590 = vrot.lane.b32.xlu0 %v1390_v30, %s990_s26  ;;  %558 = vrot.lane.b32.xlu1 %v1390_v30, %s987_s17 }
 0x2c7   :  { %580 = vrot.lane.b32.xlu0 %v1408_v7, %s989_s25  ;;  %560 = vrot.lane.b32.xlu1 %v1398_v32, %s987_s17 }
 0x2cb   :  { %578 = vrot.lane.b32.xlu0 %v1392_v15, %s989_s25  ;;  %548 = vrot.lane.b32.xlu1 %v1408_v7, %s988_s18 }
 0x2cf   :  { %608 = vrot.lane.b32.xlu0 %v1398_v32, %s991_s0  ;;  %564 = vrot.lane.b32.xlu1 %v1408_v7, %s987_s17 }
 0x2d3   :  { %606 = vrot.lane.b32.xlu0 %v1390_v30, %s991_s0  ;;  %562 = vrot.lane.b32.xlu1 %v1392_v15, %s987_s17 }
 0x2d7   :  { %624 = vrot.lane.b32.xlu0 %v1398_v32, %s992_s27  ;;  %576 = vrot.lane.b32.xlu1 %v1398_v32, %s989_s25 }
 0x2db   :  { %640 = vrot.lane.b32.xlu0 %v1398_v32, %s993_s28  ;;  %592 = vrot.lane.b32.xlu1 %v1398_v32, %s990_s26 }
 0x2df   :  { %622 = vrot.lane.b32.xlu0 %v1390_v30, %s992_s27  ;;  %596 = vrot.lane.b32.xlu1 %v1408_v7, %s990_s26 }
 0x2e3   :  { %628 = vrot.lane.b32.xlu0 %v1408_v7, %s992_s27  ;;  %594 = vrot.lane.b32.xlu1 %v1392_v15, %s990_s26 }
 0x2e7   :  { %656 = vrot.lane.b32.xlu0 %v1398_v32, %s994_s29  ;;  %610 = vrot.lane.b32.xlu1 %v1392_v15, %s991_s0 }
 0x2eb   :  { %654 = vrot.lane.b32.xlu0 %v1390_v30, %s994_s29  ;;  %612 = vrot.lane.b32.xlu1 %v1408_v7, %s991_s0 }
 0x2ef   :  { %626 = vrot.lane.b32.xlu1 %v1392_v15, %s992_s27 }
 0x2f3   :  { %642 = vrot.lane.b32.xlu1 %v1392_v15, %s993_s28 }
 0x2f7   :  { %638 = vrot.lane.b32.xlu1 %v1390_v30, %s993_s28 }
 0x2fb   :  { %644 = vrot.lane.b32.xlu1 %v1408_v7, %s993_s28 }
 0x2ff   :  { %658 = vrot.lane.b32.xlu1 %v1392_v15, %s994_s29 }
 0x303   :  { %660 = vrot.lane.b32.xlu1 %v1408_v7, %s994_s29 }
 0x30a   :  { %504 = vadd.xlane.f32.xlu0 %v503_v1 }
 0x32d   :  { %v547_v11 = vpop.permute.xlu0 %546  ;;  %v543_v17 = vpop.permute.xlu1 %542 }
 0x331   :  { %v575_v9 = vpop.permute.xlu0 %574  ;;  %v545_v12 = vpop.permute.xlu1 %544 }
 0x332   :  { %v552_v39 = vsel %vm142_vm13, %v543_v17, %v545_v12  ;;  %v551_v60 = vsel %vm142_vm13, %v545_v12, %v547_v11 }
 0x333   :  { %v555_v5 = vmul.f32 %v552_v39, %v1148_v34  ;;  %v513_v34 = vadd.f32 %v512_v63, %v510_v21 }
 0x335   :  { %v591_v20 = vpop.permute.xlu0 %590  ;;  %v559_v25 = vpop.permute.xlu1 %558  ;;  %514 = vadd.xlane.f32.xlu0 %v513_v34 }
 0x339   :  { %v581_v50 = vpop.permute.xlu0 %580  ;;  %v561_v53 = vpop.permute.xlu1 %560 }
 0x33a   :  { %v568_v62 = vsel %vm163_vm12, %v559_v25, %v561_v53 }
 0x33b   :  { %v571_v13 = vmul.f32 %v1135_v28, %v568_v62 }
 0x33d   :  { %v549_v23 = vpop.permute.xlu1 %548  ;;  %v936_v24 = vpack.c.bf16 %v571_v13, %v555_v5  ;;  %v579_v4 = vpop.permute.xlu0 %578 }
 0x33e   :  { %v553_v2 = vsel %vm142_vm13, %v549_v23, %v543_v17  ;;  %v550_v61 = vsel %vm142_vm13, %v547_v11, %v549_v23 }
 0x33f   :  { %937 = vmatprep.subr.bf16.mxu0 %v936_v24  ;;  %v554_v0 = vmul.f32 %v553_v2, %v1163_v41  ;;  %v556_v41 = vmul.f32 %v551_v60, %v1187_v56 }
 0x341   :  { %v565_v39 = vpop.permute.xlu1 %564  ;;  %v609_v62 = vpop.permute.xlu0 %608 }
 0x342   :  { %v569_v28 = vsel %vm163_vm12, %v565_v39, %v559_v25 }
 0x343   :  { %v570_v54 = vmul.f32 %v1151_v35, %v569_v28  ;;  %v557_v35 = vmul.f32 %v550_v61, %v1191_v57  ;;  %v582_v28 = vsel %vm180_vm3, %v579_v4, %v581_v50 }
 0x345   :  { %v938_v5 = vpack.c.bf16 %v570_v54, %v554_v0  ;;  %v563_v13 = vpop.permute.xlu1 %562  ;;  %v607_v21 = vpop.permute.xlu0 %606 }
 0x346   :  { %v566_v17 = vsel %vm163_vm12, %v563_v13, %v565_v39  ;;  %v567_v25 = vsel %vm163_vm12, %v561_v53, %v563_v13 }
 0x347   :  { %v572_v2 = vmul.f32 %v1168_v44, %v567_v25  ;;  %v573_v12 = vmul.f32 %v1174_v46, %v566_v17  ;;  %939 = vmatpush1.bf16.msra.mxu0 %v938_v5  ;;  %v585_v46 = vsel %vm180_vm3, %v581_v50, %v575_v9 }
 0x348   :  { %v586_v39 = vmul.f32 %v585_v46, %v1229_v33 }
 0x349   :  { %v954_v14 = vpack.c.bf16 %v572_v2, %v556_v41  ;;  %v577_v11 = vpop.permute.xlu1 %576  ;;  %v952_v18 = vpack.c.bf16 %v573_v12, %v557_v35  ;;  %v625_v53 = vpop.permute.xlu0 %624 }
 0x34a   :  { %v584_v23 = vsel %vm180_vm3, %v575_v9, %v577_v11  ;;  %v589_v9 = vmul.f32 %v582_v28, %v1249_v52 }
 0x34b   :  { %953 = vmatprep.subr.bf16.mxu1 %v952_v18  ;;  %v587_v57 = vmul.f32 %v584_v23, %v1215_v27 }
 0x34c   :  { %955 = vmatpush1.bf16.msra.mxu1 %v954_v14 }
 0x34d   :  { %v593_v24 = vpop.permute.xlu1 %592  ;;  %v641_v60 = vpop.permute.xlu0 %640 }
 0x34e   :  { %v600_v56 = vsel %vm201_vm5, %v591_v20, %v593_v24 }
 0x34f   :  { %v603_v44 = vmul.f32 %v1138_v29, %v600_v56  ;;  %v583_v29 = vsel %vm180_vm3, %v577_v11, %v579_v4 }
 0x351   :  { %v597_v1 = vpop.permute.xlu1 %596  ;;  %v940_v63 = vpack.c.bf16 %v603_v44, %v587_v57  ;;  %v623_v35 = vpop.permute.xlu0 %622 }
 0x352   :  { %v601_v34 = vsel %vm201_vm5, %v597_v1, %v591_v20  ;;  %v616_v20 = vsel %vm218_vm8, %v607_v21, %v609_v62 }
 0x353   :  { %v602_v0 = vmul.f32 %v1155_v36, %v601_v34  ;;  %941 = vmatprep.subr.bf16.mxu0 %v940_v63  ;;  %v588_v36 = vmul.f32 %v583_v29, %v1245_v51  ;;  %v618_v17 = vmul.f32 %v1221_v31, %v616_v20 }
 0x355   :  { %v942_v27 = vpack.c.bf16 %v602_v0, %v586_v39  ;;  %v595_v54 = vpop.permute.xlu1 %594 }
 0x356   :  { %v598_v61 = vsel %vm201_vm5, %v595_v54, %v597_v1  ;;  %v599_v33 = vsel %vm201_vm5, %v593_v24, %v595_v54 }
 0x357   :  { %v604_v50 = vmul.f32 %v1171_v45, %v599_v33  ;;  %v605_v4 = vmul.f32 %v1177_v47, %v598_v61  ;;  %943 = vmatpush1.bf16.msra.mxu0 %v942_v27  ;;  %v946_v45 = vpack.c.bf16 %v618_v17, %v1390_v30 }
 0x359   :  { %v958_v5 = vpack.c.bf16 %v604_v50, %v588_v36  ;;  %v611_v13 = vpop.permute.xlu1 %610  ;;  %v956_v52 = vpack.c.bf16 %v605_v4, %v589_v9 }
 0x35a   :  { %v615_v25 = vsel %vm218_vm8, %v609_v62, %v611_v13 }
 0x35b   :  { %v619_v41 = vmul.f32 %v1206_v16, %v615_v25  ;;  %957 = vmatprep.subr.bf16.mxu1 %v956_v52 }
 0x35c   :  { %959 = vmatpush1.bf16.msra.mxu1 %v958_v5 }
 0x35d   :  { %v613_v2 = vpop.permute.xlu1 %612  ;;  %v944_v51 = vpack.c.bf16 %v619_v41, %v1398_v32  ;;  %v629_v32 = vpop.permute.xlu0 %628 }
 0x35e   :  { %v614_v47 = vsel %vm218_vm8, %v611_v13, %v613_v2  ;;  %v617_v12 = vsel %vm218_vm8, %v613_v2, %v607_v21  ;;  %v633_v46 = vsel %vm235_vm0, %v629_v32, %v623_v35 }
 0x35f   :  { %v620_v31 = vmul.f32 %v1232_v37, %v614_v47  ;;  %v621_v62 = vmul.f32 %v1235_v38, %v617_v12  ;;  %945 = vmatprep.subr.bf16.mxu0 %v944_v51 }
 0x360   :  { %947 = vmatpush1.bf16.msra.mxu0 %v946_v45 }
 0x361   :  { %v962_v16 = vpack.c.bf16 %v620_v31, %v1392_v15  ;;  %v627_v14 = vpop.permute.xlu1 %626  ;;  %v960_v11 = vpack.c.bf16 %v621_v62, %v1408_v7  ;;  %v632_v15 = vsel %vm235_vm0, %v623_v35, %v625_v53  ;;  %v657_v23 = vpop.permute.xlu0 %656 }
 0x362   :  { %v631_v30 = vsel %vm235_vm0, %v625_v53, %v627_v14  ;;  %v634_v57 = vmul.f32 %v632_v15, %v1307_v55  ;;  %v637_v55 = vmul.f32 %v633_v46, %v1327_v10 }
 0x363   :  { %961 = vmatprep.subr.bf16.mxu1 %v960_v11  ;;  %v635_v37 = vmul.f32 %v631_v30, %v1292_v48 }
 0x364   :  { %963 = vmatpush1.bf16.msra.mxu1 %v962_v16  ;;  %v898_v16 = vld [vmem:[%s1617_s3 + $0x20] sm:$0xff] }
 0x365   :  { %v643_v18 = vpop.permute.xlu1 %642  ;;  %v655_v53 = vpop.permute.xlu0 %654 }
 0x366   :  { %v647_v21 = vsel %vm256_vm9, %v641_v60, %v643_v18  ;;  %v664_v0 = vsel %vm273_vm14, %v655_v53, %v657_v23 }
 0x367   :  { %v651_v38 = vmul.f32 %v1282_v26, %v647_v21  ;;  %v630_v26 = vsel %vm235_vm0, %v627_v14, %v629_v32  ;;  %v666_v10 = vmul.f32 %v664_v0, %v1355_v43  ;;  %v899_v32 = vld [vmem:[%s1617_s3 + $0x28] sm:$0xff] }
 0x369   :  { %v639_v24 = vpop.permute.xlu1 %638  ;;  %v948_v7 = vpack.c.bf16 %v651_v38, %v635_v37 }
 0x36a   :  { %v648_v56 = vsel %vm256_vm9, %v639_v24, %v641_v60 }
 0x36b   :  { %v650_v44 = vmul.f32 %v1298_v3, %v648_v56  ;;  %949 = vmatprep.subr.bf16.mxu0 %v948_v7  ;;  %v636_v3 = vmul.f32 %v630_v26, %v1323_v8  ;;  %v902_v7 = vld [vmem:[%s1617_s3 + $0x10] sm:$0xff] }
 0x36d   :  { %v950_v48 = vpack.c.bf16 %v650_v44, %v634_v57  ;;  %v645_v1 = vpop.permute.xlu1 %644  ;;  %v903_v44 = vld [vmem:[%s1617_s3 + $0x18] sm:$0xff] }
 0x36e   :  { %v646_v63 = vsel %vm256_vm9, %v643_v18, %v645_v1  ;;  %v649_v34 = vsel %vm256_vm9, %v645_v1, %v639_v24 }
 0x36f   :  { %v652_v39 = vmul.f32 %v1310_v58, %v646_v63  ;;  %v653_v28 = vmul.f32 %v1313_v59, %v649_v34  ;;  %951 = vmatpush1.bf16.msra.mxu0 %v950_v48  ;;  %v670_v58 = vld [vmem:[%s1618_s2] sm:$0xff] }
 0x370   :  { %v1624_v63 = vld [vmem:[#allocation2_spill] sm:$0xff] }
 0x371   :  { %v966_v29 = vpack.c.bf16 %v652_v39, %v636_v3  ;;  %v659_v27 = vpop.permute.xlu1 %658  ;;  %v964_v54 = vpack.c.bf16 %v653_v28, %v637_v55  ;;  %v1625_v55 = vld [vmem:[#allocation3_spill] sm:$0xff] }
 0x372   :  { %v663_v9 = vsel %vm273_vm14, %v657_v23, %v659_v27 }
 0x373   :  { %v667_v60 = vmul.f32 %v663_v9, %v1332_v19  ;;  %965 = vmatprep.subr.bf16.mxu1 %v964_v54 }
 0x374   :  { %967 = vmatpush1.bf16.msra.mxu1 %v966_v29 }
 0x375   :  { %690 = vmatprep.subr.mxu0 %v667_v60  ;;  %v661_v59 = vpop.permute.xlu1 %660 }
 0x376   :  { %v662_v8 = vsel %vm273_vm14, %v659_v27, %v661_v59  ;;  %v665_v61 = vsel %vm273_vm14, %v661_v59, %v655_v53  ;;  %691 = vmatpush1.msra.mxu0 %v666_v10 }
 0x377   :  { %v668_v33 = vmul.f32 %v662_v8, %v1351_v42  ;;  %v669_v19 = vmul.f32 %v665_v61, %v1359_v22  ;;  %900 = vmatmul.mubr.msk.f32.vlgmr.msra.gmra.mrb[4].mxu0 %vm288_vm15, %v670_v58 }
 0x379   :  { %761 = vmatprep.subr.mxu1 %v669_v19 }
 0x37a   :  { %762 = vmatpush1.msra.mxu1 %v668_v33 }
 0x37b   :  { %901 = vmatmul.mubr.msk.f32.vlgmr.msra.gmra.mrb[4].mxu1 %vm288_vm15, %v670_v58 }
 0x397   :  { %v505_v43 = vpop.xlane.xlu0 %504 }
 0x398   :  { %v506_v20 = vmul.f32 0.001953125, %v505_v43 }
 0x39a   :  { %v517_v50 = vmul.f32 %v506_v20, %v506_v20 }
 0x3c2   :  { %v515_v36 = vpop.xlane.xlu0 %514 }
 0x3c3   :  { %v516_v4 = vmul.f32 0.001953125, %v515_v36 }
 0x3c5   :  { %v518_v5 = vsub.f32 %v516_v4, %v517_v50 }
 0x3c7   :  { %v519_v17 = vadd.f32 1e-05, %v518_v5 }
 0x3c9   :  { %982 = vrsqrt.f32 %v519_v17 }
 0x3d3   :  { %v983_v62 = vpop.eup %982 }
 0x3d4   :  { %v521_v14 = vmul.f32 %v983_v62, %v898_v16 }
 0x3d6   :  { %v522_v11 = vmul.f32 %v521_v14, %v506_v20 }
 0x3d8   :  { %v523_v30 = vsub.f32 %v899_v32, %v522_v11 }
 0x44a   :  { %v740_v13 = vpop.f32.mrb[4].mxu0 }
 0x44b   :  { %v826_v6 = vmul.f32 %v740_v13, %v740_v13  ;;  %v742_v52 = vpop.f32.mrb[5].mxu0 }
 0x44c   :  { %v820_v25 = vadd.f32 %v742_v52, %v740_v13  ;;  %v827_v42 = vmul.f32 %v742_v52, %v742_v52 }
 0x44e   :  { %v830_v41 = vadd.f32 %v827_v42, %v826_v6  ;;  %v811_v22 = vpop.f32.mrb[4].mxu1 }
 0x44f   :  { %v828_v35 = vmul.f32 %v811_v22, %v811_v22  ;;  %v813_v2 = vpop.f32.mrb[5].mxu1  ;;  %v821_v51 = vadd.f32 %v820_v25, %v811_v22 }
 0x450   :  { %v829_v45 = vmul.f32 %v813_v2, %v813_v2 }
 0x451   :  { %v822_v47 = vadd.f32 %v821_v51, %v813_v2  ;;  %v831_v12 = vadd.f32 %v830_v41, %v828_v35 }
 0x453   :  { %823 = vadd.xlane.f32.xlu1 %v822_v47  ;;  %v832_v31 = vadd.f32 %v831_v12, %v829_v45 }
 0x455   :  { %833 = vadd.xlane.f32.xlu0 %v832_v31 }
 0x464   :  { %526 = vperm.xlu1 %979, %v521_v14  }
 0x468   :  { %535 = vperm.xlu1 %979, %v523_v30  }
 0x4e0   :  { %v824_v18 = vpop.xlane.xlu1 %823 }
 0x4e1   :  { %v825_v21 = vmul.f32 0.001953125, %v824_v18 }
 0x4e2   :  { %v834_v37 = vpop.xlane.xlu0 %833 }
 0x4e3   :  { %v836_v38 = vmul.f32 %v825_v21, %v825_v21  ;;  %v835_v15 = vmul.f32 0.001953125, %v834_v37 }
 0x4e4   :  { %v527_v48 = vpop.permute.xlu1 %526 }
 0x4e5   :  { %v837_v23 = vsub.f32 %v835_v15, %v836_v38  ;;  %v529_v34 = vmul.f32 %v527_v48, %v1624_v63  ;;  %v530_v3 = vmul.f32 %v527_v48, %v1625_v55  ;;  %v531_v39 = vmul.f32 %v527_v48, %v1464_v40 }
 0x4e6   :  { %v532_v28 = vmul.f32 %v527_v48, %v1472_v49 }
 0x4e7   :  { %v838_v24 = vadd.f32 1e-05, %v837_v23 }
 0x4e8   :  { %v536_v1 = vpop.permute.xlu1 %535 }
 0x4e9   :  { %984 = vrsqrt.f32 %v838_v24  ;;  %v538_v9 = vadd.f32 %v536_v1, %v529_v34  ;;  %v539_v60 = vadd.f32 %v536_v1, %v530_v3  ;;  %v540_v10 = vadd.f32 %v536_v1, %v531_v39 }
 0x4ea   :  { %v541_v58 = vadd.f32 %v536_v1, %v532_v28 }
 0x4f3   :  { %v985_v56 = vpop.eup %984 }
 0x4f4   :  { %v840_v57 = vmul.f32 %v985_v56, %v902_v7 }
 0x4f6   :  { %845 = vperm.xlu0 %978, %v840_v57   ;;  %v841_v46 = vmul.f32 %v840_v57, %v825_v21 }
 0x4f8   :  { %v842_v26 = vsub.f32 %v903_v44, %v841_v46 }
 0x4fa   :  { %854 = vperm.xlu1 %979, %v842_v26  }
 0x575   :  { %v846_v53 = vpop.permute.xlu0 %845 }
 0x576   :  { %v848_v0 = vmul.f32 %v846_v53, %v740_v13  ;;  %v849_v29 = vmul.f32 %v846_v53, %v742_v52  ;;  %v850_v27 = vmul.f32 %v846_v53, %v811_v22  ;;  %v851_v54 = vmul.f32 %v846_v53, %v813_v2 }
 0x579   :  { %v855_v59 = vpop.permute.xlu1 %854 }
 0x57a   :  { %v857_v8 = vadd.f32 %v855_v59, %v848_v0  ;;  %v858_v61 = vadd.f32 %v855_v59, %v849_v29  ;;  %v859_v33 = vadd.f32 %v855_v59, %v850_v27  ;;  %v860_v19 = vadd.f32 %v855_v59, %v851_v54 }
 0x57c   :  { %v861_v43 = vadd.f32 %v857_v8, %v538_v9  ;;  %v862_v20 = vadd.f32 %v858_v61, %v539_v60  ;;  %v863_v36 = vadd.f32 %v859_v33, %v540_v10  ;;  %v864_v50 = vadd.f32 %v860_v19, %v541_v58 }
 0x57e   :  { %v865_v40 = vmax.f32 %v861_v43, 0.0  ;;  %v866_v4 = vmax.f32 %v862_v20, 0.0  ;;  %v867_v49 = vmax.f32 %v863_v36, 0.0  ;;  %v868_v5 = vmax.f32 %v864_v50, 0.0 }
 0x580   :  { %869 = vst [vmem:[%s1619_s4] sm:$0xff] %v865_v40  ;;  %870 = vst [vmem:[%s1619_s4 + $0x8] sm:$0xff] %v866_v4 }
 0x581   :  { %871 = vst [vmem:[%s1619_s4 + $0x10] sm:$0xff] %v867_v49  ;;  %872 = vst [vmem:[%s1619_s4 + $0x18] sm:$0xff] %v868_v5 }

</bundles_post_ra>
